<compile_context>
chip_gen: v5e
topology: v5e:2x2
jax: 0.10.0
libtpu: 0.0.40
codegen_flags: <defaults>
</compile_context>

<pallas_src>
import math
import functools

import jax
import jax.numpy as jnp
from jax.experimental import pallas as pl
from jax.experimental.pallas import tpu as pltpu

LN_EPS = 1e-5


# ----------------------------- math helpers ---------------------------------
def _layernorm(x, g, b):
    mu = jnp.mean(x, axis=-1, keepdims=True)
    var = jnp.mean((x - mu) ** 2, axis=-1, keepdims=True)
    return (x - mu) * jax.lax.rsqrt(var + LN_EPS) * g + b


def _gelu_new(x):
    # GPT-2 "gelu_new" (tanh approximation)
    return 0.5 * x * (1.0 + jnp.tanh(math.sqrt(2.0 / math.pi) * (x + 0.044715 * x ** 3)))


# ----------------------------- Pallas kernel --------------------------------
def gpt2_block_kernel(x_ref,
                      ln1_g_ref, ln1_b_ref,
                      w_qkv_ref, b_qkv_ref,
                      w_o_ref, b_o_ref,
                      ln2_g_ref, ln2_b_ref,
                      w_fc_ref, b_fc_ref,
                      w_fcp_ref, b_fcp_ref,
                      lnf_g_ref, lnf_b_ref,
                      out_ref, *, n_head, apply_final_ln):
    f32 = jnp.float32
    bf16 = jnp.bfloat16

    x = x_ref[0].astype(f32)                      # (S, D); residual stream is bf16 in HBM
    S, D = x.shape
    hd = D // n_head

    # ---- attention sublayer ----
    ln1x = _layernorm(x, ln1_g_ref[...], ln1_b_ref[...]).astype(bf16)

    # fused full-width QKV projection: one lane-dense (S,D)@(D,3D) MXU matmul.
    # 1/sqrt(hd) is pre-folded into the Q third of w_qkv / b_qkv (wrapper side).
    qkv = jnp.dot(ln1x, w_qkv_ref[...], preferred_element_type=f32) + b_qkv_ref[...]
    q = qkv[:, 0:D]
    k = qkv[:, D:2 * D]
    v = qkv[:, 2 * D:3 * D]

    # causal mask built once (loop-invariant)
    row = jax.lax.broadcasted_iota(jnp.int32, (S, S), 0)
    col = jax.lax.broadcasted_iota(jnp.int32, (S, S), 1)
    causal = row >= col
    neg = jnp.finfo(f32).min

    # per-head attention; head outputs merged lane-contiguously so that the
    # attention c_proj is ONE dense (S,D)@(D,D) matmul.
    # TODO(synk): for H=12 / S>=512 use lax.fori_loop over heads + flash-style
    #             query tiling instead of this fully-unrolled loop.
    head_outs = []
    for h in range(n_head):
        lo = h * hd
        qh = q[:, lo:lo + hd].astype(bf16)
        kh = k[:, lo:lo + hd].astype(bf16)
        vh = v[:, lo:lo + hd].astype(bf16)
        s = jax.lax.dot_general(qh, kh, (((1,), (1,)), ((), ())),
                                preferred_element_type=f32)        # (S, S) = q @ k^T
        s = jnp.where(causal, s, neg)
        s = s - jnp.max(s, axis=-1, keepdims=True)
        p = jnp.exp(s)
        p = p / jnp.sum(p, axis=-1, keepdims=True)                 # exact softmax
        head_outs.append(jnp.dot(p.astype(bf16), vh, preferred_element_type=f32))
    merged = jnp.concatenate(head_outs, axis=-1).astype(bf16)      # (S, D), heads along lanes

    attn = jnp.dot(merged, w_o_ref[...], preferred_element_type=f32) + b_o_ref[...]
    h1 = x + attn                                                   # attention residual (f32)

    # ---- MLP sublayer ----
    ln2x = _layernorm(h1, ln2_g_ref[...], ln2_b_ref[...]).astype(bf16)
    ff = jnp.dot(ln2x, w_fc_ref[...], preferred_element_type=f32) + b_fc_ref[...]
    ff = _gelu_new(ff)                                              # f32 gelu
    ff = jnp.dot(ff.astype(bf16), w_fcp_ref[...], preferred_element_type=f32) + b_fcp_ref[...]
    out = h1 + ff                                                   # MLP residual (f32)

    if apply_final_ln:                                              # fused ln_f (last block)
        out = _layernorm(out, lnf_g_ref[...], lnf_b_ref[...])

    out_ref[0] = out.astype(out_ref.dtype)


# ----------------------------- wrappers --------------------------------------
def _vmem_cap_bytes():
    """75% of physical per-core VMEM; 48 MiB fallback (safe on every generation)."""
    try:
        info = pltpu.get_tpu_info()
        cap = getattr(info, "vmem_capacity_bytes", None)
        if cap:
            return int(0.75 * cap)
    except Exception:
        pass
    return 48 * 2 ** 20


def run_block(x, lp, lnf_g, lnf_b, n_head, apply_final_ln):
    B, S, D = x.shape
    I = lp["w_fc"].shape[1]
    out_dtype = jnp.float32 if apply_final_ln else jnp.bfloat16

    def rep(shape):
        # grid-invariant (replicated) operand
        n = len(shape)
        return pl.BlockSpec(shape, lambda b, _n=n: (0,) * _n)

    in_specs = [
        pl.BlockSpec((1, S, D), lambda b: (b, 0, 0)),   # x (bf16 residual stream)
        rep((1, D)), rep((1, D)),                       # ln_1 g, b
        rep((D, 3 * D)), rep((1, 3 * D)),               # fused QKV weight (bf16), bias (f32, Q scaled)
        rep((D, D)), rep((1, D)),                       # attn c_proj weight, bias
        rep((1, D)), rep((1, D)),                       # ln_2 g, b
        rep((D, I)), rep((1, I)),                       # c_fc weight, bias
        rep((I, D)), rep((1, D)),                       # mlp c_proj weight, bias
        rep((1, D)), rep((1, D)),                       # ln_f g, b (only applied on last block)
    ]

    # VMEM budget estimate: bf16 weights + f32 activations, 4x margin,
    # clamped below 75% of physical VMEM (never the full 64 MiB of a v7x TC).
    wbytes = 2 * (4 * D * D + 2 * D * I)                              # bf16 weight matrices
    abytes = 4 * (3 * S * D + 4 * S * D + n_head * S * S + S * I)     # f32 activations (worst case)
    vmem_limit = int(min(_vmem_cap_bytes(), max(16 * 2 ** 20, 4 * (wbytes + abytes))))

    return pl.pallas_call(
        functools.partial(gpt2_block_kernel, n_head=n_head,
                          apply_final_ln=apply_final_ln),
        out_shape=jax.ShapeDtypeStruct((B, S, D), out_dtype),
        grid=(B,),
        in_specs=in_specs,
        out_specs=pl.BlockSpec((1, S, D), lambda b: (b, 0, 0)),
        compiler_params=pltpu.CompilerParams(
            dimension_semantics=("parallel",),
            vmem_limit_bytes=vmem_limit),
    )(x,
      lp["ln1_g"], lp["ln1_b"],
      lp["w_qkv"], lp["b_qkv"],
      lp["w_o"], lp["b_o"],
      lp["ln2_g"], lp["ln2_b"],
      lp["w_fc"], lp["b_fc"], lp["w_fcp"], lp["b_fcp"],
      lnf_g, lnf_b)


def embed(input_ids, kp):
    # embed_input: wte lookup + wpe lookup + add (dropout = identity under inference_mode)
    # TODO(synk): embedding-table gather kept in plain JAX (data-dependent gather).
    B, S = input_ids.shape
    pos = jnp.arange(S, dtype=jnp.int32)
    h = kp["wte"][input_ids] + kp["wpe"][pos][None, :, :]
    return h.astype(jnp.bfloat16)          # bf16 residual stream (halves activation HBM traffic)


def gpt2_forward(input_ids, kp, n_head):
    h = embed(input_ids, kp)
    n_layer = len(kp["layers"])
    for li, lp in enumerate(kp["layers"]):
        h = run_block(h, lp, kp["lnf_g"], kp["lnf_b"], n_head,
                      apply_final_ln=(li == n_layer - 1))
    return h                               # f32 (ln_f fused into last block)


# --------------------- wrapper-side weight layout prep ------------------------
def preprocess_params(params, n_head):
    """Keep c_attn fused & lane-dense as (D, 3D), fold 1/sqrt(hd) into the Q
    third, and cast all matmul weights to bf16 (biases stay f32)."""
    D = params["wte"].shape[1]
    hd = D // n_head
    scale = 1.0 / math.sqrt(hd)
    bf16 = jnp.bfloat16

    qscale = jnp.concatenate([jnp.full((1, D), scale, jnp.float32),
                              jnp.ones((1, 2 * D), jnp.float32)], axis=1)   # (1, 3D)

    out = {"wte": params["wte"], "wpe": params["wpe"],
           "lnf_g": params["lnf_g"], "lnf_b": params["lnf_b"], "layers": []}
    for lp in params["layers"]:
        out["layers"].append({
            "ln1_g": lp["ln1_g"], "ln1_b": lp["ln1_b"],
            "w_qkv": (lp["w_attn"] * qscale).astype(bf16),   # (D, 3D)
            "b_qkv": lp["b_attn"] * qscale,                  # (1, 3D) f32
            "w_o": lp["w_proj"].astype(bf16),                # (D, D)
            "b_o": lp["b_proj"],
            "ln2_g": lp["ln2_g"], "ln2_b": lp["ln2_b"],
            "w_fc": lp["w_fc"].astype(bf16), "b_fc": lp["b_fc"],
            "w_fcp": lp["w_fcp"].astype(bf16), "b_fcp": lp["b_fcp"],
        })
    return out


# ----------------------------- pure-JAX reference ----------------------------
def gpt2_forward_ref(input_ids, kp, n_head):
    """Plain-XLA reference using the exact same precision recipe as the kernel."""
    f32, bf = jnp.float32, jnp.bfloat16
    B, S = input_ids.shape
    D = kp["wte"].shape[1]
    hd = D // n_head
    H = n_head
    causal = jnp.tril(jnp.ones((S, S), bool))
    neg = jnp.finfo(f32).min

    h = embed(input_ids, kp)                                   # bf16
    n_layer = len(kp["layers"])
    for li, lp in enumerate(kp["layers"]):
        x = h.astype(f32)
        t = _layernorm(x, lp["ln1_g"], lp["ln1_b"]).astype(bf)
        qkv = jnp.einsum("bsd,de->bse", t, lp["w_qkv"],
                         preferred_element_type=f32) + lp["b_qkv"]
        q, k, v = qkv[..., 0:D], qkv[..., D:2 * D], qkv[..., 2 * D:3 * D]

        def heads(z):
            return z.reshape(B, S, H, hd).transpose(0, 2, 1, 3).astype(bf)

        qh, kh, vh = heads(q), heads(k), heads(v)
        s = jnp.einsum("bhqe,bhke->bhqk", qh, kh, preferred_element_type=f32)
        s = jnp.where(causal, s, neg)
        p = jax.nn.softmax(s, axis=-1)
        o = jnp.einsum("bhqk,bhke->bhqe", p.astype(bf), vh, preferred_element_type=f32)
        merged = o.transpose(0, 2, 1, 3).reshape(B, S, D).astype(bf)
        a = jnp.einsum("bsd,de->bse", merged, lp["w_o"],
                       preferred_element_type=f32) + lp["b_o"]
        h1 = x + a

        t2 = _layernorm(h1, lp["ln2_g"], lp["ln2_b"]).astype(bf)
        ff = jnp.einsum("bsd,di->bsi", t2, lp["w_fc"],
                        preferred_element_type=f32) + lp["b_fc"]
        ff = _gelu_new(ff)
        ff = jnp.einsum("bsi,id->bsd", ff.astype(bf), lp["w_fcp"],
                        preferred_element_type=f32) + lp["b_fcp"]
        out = h1 + ff

        if li == n_layer - 1:
            h = _layernorm(out, kp["lnf_g"], kp["lnf_b"])
        else:
            h = out.astype(bf)
    return h


# ----------------------------- param init ------------------------------------
def init_params(key, n_layer, vocab, n_pos, D, I):
    keys = jax.random.split(key, 2 + 6 * n_layer)
    p = {
        "wte": 0.02 * jax.random.normal(keys[0], (vocab, D), jnp.float32),
        "wpe": 0.01 * jax.random.normal(keys[1], (n_pos, D), jnp.float32),
        "lnf_g": jnp.ones((1, D), jnp.float32),
        "lnf_b": jnp.zeros((1, D), jnp.float32),
        "layers": [],
    }
    for l in range(n_layer):
        k = keys[2 + 6 * l: 2 + 6 * (l + 1)]
        p["layers"].append({
            "ln1_g": jnp.ones((1, D), jnp.float32),
            "ln1_b": jnp.zeros((1, D), jnp.float32),
            "w_attn": 0.02 * jax.random.normal(k[0], (D, 3 * D), jnp.float32),
            "b_attn": jnp.zeros((1, 3 * D), jnp.float32),
            "w_proj": 0.02 * jax.random.normal(k[1], (D, D), jnp.float32),
            "b_proj": jnp.zeros((1, D), jnp.float32),
            "ln2_g": jnp.ones((1, D), jnp.float32),
            "ln2_b": jnp.zeros((1, D), jnp.float32),
            "w_fc": 0.02 * jax.random.normal(k[2], (D, I), jnp.float32),
            "b_fc": 0.01 * jax.random.normal(k[3], (1, I), jnp.float32),
            "w_fcp": 0.02 * jax.random.normal(k[4], (I, D), jnp.float32),
            "b_fcp": 0.01 * jax.random.normal(k[5], (1, D), jnp.float32),
        })
    return p


# ----------------------------- main -------------------------------------------
if __name__ == "__main__":
    import numpy as np

    B, S, D, H, I = 2, 8, 32, 4, 128        # batch, seq, hidden, heads, mlp-inner
    VOCAB, N_POS, N_LAYER = 64, 16, 2

    key = jax.random.PRNGKey(0)
    k_ids, k_par = jax.random.split(key)
    input_ids = jax.random.randint(k_ids, (B, S), 0, VOCAB, dtype=jnp.int32)
    params = init_params(k_par, N_LAYER, VOCAB, N_POS, D, I)
    kparams = preprocess_params(params, n_head=H)

    out = gpt2_forward(input_ids, kparams, n_head=H)
    out = jax.block_until_ready(out)

    ref = gpt2_forward_ref(input_ids, kparams, n_head=H)
    ref = jax.block_until_ready(ref)

    assert out.shape == (B, S, D)
    assert out.dtype == jnp.float32
    assert np.allclose(np.asarray(out, np.float32), np.asarray(ref, np.float32),
                       atol=2e-2, rtol=2e-2), \
        f"max abs diff = {np.max(np.abs(np.asarray(out, np.float32) - np.asarray(ref, np.float32)))}"

    print("KERNEL_OK")
</pallas_src>

<mosaic_0001>
module attributes {stable_mosaic.version = 11 : i64} {
  func.func @gpt2_block_kernel(%arg0: i32, %arg1: memref<1x8x32xbf16, #tpu.memory_space<vmem>>, %arg2: memref<1x32xf32, #tpu.memory_space<vmem>>, %arg3: memref<1x32xf32, #tpu.memory_space<vmem>>, %arg4: memref<32x96xbf16, #tpu.memory_space<vmem>>, %arg5: memref<1x96xf32, #tpu.memory_space<vmem>>, %arg6: memref<32x32xbf16, #tpu.memory_space<vmem>>, %arg7: memref<1x32xf32, #tpu.memory_space<vmem>>, %arg8: memref<1x32xf32, #tpu.memory_space<vmem>>, %arg9: memref<1x32xf32, #tpu.memory_space<vmem>>, %arg10: memref<32x128xbf16, #tpu.memory_space<vmem>>, %arg11: memref<1x128xf32, #tpu.memory_space<vmem>>, %arg12: memref<128x32xbf16, #tpu.memory_space<vmem>>, %arg13: memref<1x32xf32, #tpu.memory_space<vmem>>, %arg14: memref<1x32xf32, #tpu.memory_space<vmem>>, %arg15: memref<1x32xf32, #tpu.memory_space<vmem>>, %arg16: memref<1x8x32xbf16, #tpu.memory_space<vmem>>) attributes {dimension_semantics = [#tpu.dimension_semantics<parallel>], iteration_bounds = array<i64: 2>, scalar_prefetch = 0 : i64, scratch_operands = 0 : i64, tpu.core_type = #tpu.core_type<tc>, window_params = [{transform_indices = @transform_0, window_bounds = array<i64: 1, 8, 32>}, {pipeline_mode = #tpu.pipeline_mode<synchronous>, transform_indices = @transform_1, window_bounds = array<i64: 1, 32>}, {pipeline_mode = #tpu.pipeline_mode<synchronous>, transform_indices = @transform_2, window_bounds = array<i64: 1, 32>}, {pipeline_mode = #tpu.pipeline_mode<synchronous>, transform_indices = @transform_3, window_bounds = array<i64: 32, 96>}, {pipeline_mode = #tpu.pipeline_mode<synchronous>, transform_indices = @transform_4, window_bounds = array<i64: 1, 96>}, {pipeline_mode = #tpu.pipeline_mode<synchronous>, transform_indices = @transform_5, window_bounds = array<i64: 32, 32>}, {pipeline_mode = #tpu.pipeline_mode<synchronous>, transform_indices = @transform_6, window_bounds = array<i64: 1, 32>}, {pipeline_mode = #tpu.pipeline_mode<synchronous>, transform_indices = @transform_7, window_bounds = array<i64: 1, 32>}, {pipeline_mode = #tpu.pipeline_mode<synchronous>, transform_indices = @transform_8, window_bounds = array<i64: 1, 32>}, {pipeline_mode = #tpu.pipeline_mode<synchronous>, transform_indices = @transform_9, window_bounds = array<i64: 32, 128>}, {pipeline_mode = #tpu.pipeline_mode<synchronous>, transform_indices = @transform_10, window_bounds = array<i64: 1, 128>}, {pipeline_mode = #tpu.pipeline_mode<synchronous>, transform_indices = @transform_11, window_bounds = array<i64: 128, 32>}, {pipeline_mode = #tpu.pipeline_mode<synchronous>, transform_indices = @transform_12, window_bounds = array<i64: 1, 32>}, {pipeline_mode = #tpu.pipeline_mode<synchronous>, transform_indices = @transform_13, window_bounds = array<i64: 1, 32>}, {pipeline_mode = #tpu.pipeline_mode<synchronous>, transform_indices = @transform_14, window_bounds = array<i64: 1, 32>}, {transform_indices = @transform_15, window_bounds = array<i64: 1, 8, 32>}]} {
    %c0 = arith.constant 0 : index
    %c0_0 = arith.constant 0 : index
    %c0_1 = arith.constant 0 : index
    %0 = vector.load %arg1[%c0, %c0_0, %c0_1] : memref<1x8x32xbf16, #tpu.memory_space<vmem>>, vector<1x8x32xbf16>
    %1 = vector.shape_cast %0 : vector<1x8x32xbf16> to vector<8x32xbf16>
    %2 = arith.extf %1 : vector<8x32xbf16> to vector<8x32xf32>
    %c0_2 = arith.constant 0 : index
    %c0_3 = arith.constant 0 : index
    %3 = vector.load %arg2[%c0_2, %c0_3] : memref<1x32xf32, #tpu.memory_space<vmem>>, vector<1x32xf32>
    %c0_4 = arith.constant 0 : index
    %c0_5 = arith.constant 0 : index
    %4 = vector.load %arg3[%c0_4, %c0_5] : memref<1x32xf32, #tpu.memory_space<vmem>>, vector<1x32xf32>
    %cst = arith.constant dense<0.000000e+00> : vector<8xf32>
    %5 = vector.multi_reduction <add>, %2, %cst [1] : vector<8x32xf32> to vector<8xf32>
    %6 = vector.shape_cast %5 : vector<8xf32> to vector<8x1xf32>
    %cst_6 = arith.constant 3.200000e+01 : f32
    %7 = vector.broadcast %cst_6 : f32 to vector<8x1xf32>
    %8 = arith.divf %6, %7 : vector<8x1xf32>
    %9 = vector.broadcast %8 : vector<8x1xf32> to vector<8x32xf32>
    %10 = arith.subf %2, %9 : vector<8x32xf32>
    %11 = arith.mulf %10, %10 : vector<8x32xf32>
    %cst_7 = arith.constant dense<0.000000e+00> : vector<8xf32>
    %12 = vector.multi_reduction <add>, %11, %cst_7 [1] : vector<8x32xf32> to vector<8xf32>
    %13 = vector.shape_cast %12 : vector<8xf32> to vector<8x1xf32>
    %cst_8 = arith.constant 3.200000e+01 : f32
    %14 = vector.broadcast %cst_8 : f32 to vector<8x1xf32>
    %15 = arith.divf %13, %14 : vector<8x1xf32>
    %16 = vector.broadcast %8 : vector<8x1xf32> to vector<8x32xf32>
    %17 = arith.subf %2, %16 : vector<8x32xf32>
    %cst_9 = arith.constant 9.99999974E-6 : f32
    %18 = vector.broadcast %cst_9 : f32 to vector<8x1xf32>
    %19 = arith.addf %15, %18 : vector<8x1xf32>
    %20 = math.rsqrt %19 : vector<8x1xf32>
    %21 = vector.broadcast %20 : vector<8x1xf32> to vector<8x32xf32>
    %22 = arith.mulf %17, %21 : vector<8x32xf32>
    %23 = vector.broadcast %3 : vector<1x32xf32> to vector<8x32xf32>
    %24 = arith.mulf %22, %23 : vector<8x32xf32>
    %25 = vector.broadcast %4 : vector<1x32xf32> to vector<8x32xf32>
    %26 = arith.addf %24, %25 : vector<8x32xf32>
    %27 = arith.truncf %26 : vector<8x32xf32> to vector<8x32xbf16>
    %c0_10 = arith.constant 0 : index
    %c0_11 = arith.constant 0 : index
    %28 = vector.load %arg4[%c0_10, %c0_11] : memref<32x96xbf16, #tpu.memory_space<vmem>>, vector<32x96xbf16>
    %cst_12 = arith.constant dense<0.000000e+00> : vector<8x96xf32>
    %29 = tpu.matmul %27, %28, %cst_12 {dimension_numbers = #tpu.dot_dimension_numbers<[1], [0], [0], [1], [0, 0, 1, 1], [], []>} : vector<8x32xbf16>, vector<32x96xbf16>, vector<8x96xf32> -> vector<8x96xf32>
    %c0_13 = arith.constant 0 : index
    %c0_14 = arith.constant 0 : index
    %30 = vector.load %arg5[%c0_13, %c0_14] : memref<1x96xf32, #tpu.memory_space<vmem>>, vector<1x96xf32>
    %31 = vector.broadcast %30 : vector<1x96xf32> to vector<8x96xf32>
    %32 = arith.addf %29, %31 : vector<8x96xf32>
    %33 = vector.extract_strided_slice %32 {offsets = [0, 0], sizes = [8, 32], strides = [1, 1]} : vector<8x96xf32> to vector<8x32xf32>
    %34 = vector.extract_strided_slice %32 {offsets = [0, 32], sizes = [8, 32], strides = [1, 1]} : vector<8x96xf32> to vector<8x32xf32>
    %35 = vector.extract_strided_slice %32 {offsets = [0, 64], sizes = [8, 32], strides = [1, 1]} : vector<8x96xf32> to vector<8x32xf32>
    %36 = tpu.iota {dimensions = array<i32: 0>} : vector<8x8xi32>
    %37 = tpu.iota {dimensions = array<i32: 1>} : vector<8x8xi32>
    %38 = arith.cmpi sge, %36, %37 : vector<8x8xi32>
    %39 = vector.extract_strided_slice %33 {offsets = [0, 0], sizes = [8, 8], strides = [1, 1]} : vector<8x32xf32> to vector<8x8xf32>
    %40 = arith.truncf %39 : vector<8x8xf32> to vector<8x8xbf16>
    %41 = vector.extract_strided_slice %34 {offsets = [0, 0], sizes = [8, 8], strides = [1, 1]} : vector<8x32xf32> to vector<8x8xf32>
    %42 = arith.truncf %41 : vector<8x8xf32> to vector<8x8xbf16>
    %43 = vector.extract_strided_slice %35 {offsets = [0, 0], sizes = [8, 8], strides = [1, 1]} : vector<8x32xf32> to vector<8x8xf32>
    %44 = arith.truncf %43 : vector<8x8xf32> to vector<8x8xbf16>
    %cst_15 = arith.constant dense<0.000000e+00> : vector<8x8xf32>
    %45 = tpu.matmul %40, %42, %cst_15 {dimension_numbers = #tpu.dot_dimension_numbers<[1], [1], [0], [0], [0, 0, 1, 0], [], []>} : vector<8x8xbf16>, vector<8x8xbf16>, vector<8x8xf32> -> vector<8x8xf32>
    %cst_16 = arith.constant -3.40282347E+38 : f32
    %46 = vector.broadcast %cst_16 : f32 to vector<8x8xf32>
    %47 = arith.select %38, %45, %46 : vector<8x8xi1>, vector<8x8xf32>
    %cst_17 = arith.constant dense<0xFF800000> : vector<8xf32>
    %48 = vector.multi_reduction <maximumf>, %47, %cst_17 [1] : vector<8x8xf32> to vector<8xf32>
    %49 = vector.shape_cast %48 : vector<8xf32> to vector<8x1xf32>
    %50 = vector.broadcast %49 : vector<8x1xf32> to vector<8x8xf32>
    %51 = arith.subf %47, %50 : vector<8x8xf32>
    %52 = math.exp %51 : vector<8x8xf32>
    %cst_18 = arith.constant dense<0.000000e+00> : vector<8xf32>
    %53 = vector.multi_reduction <add>, %52, %cst_18 [1] : vector<8x8xf32> to vector<8xf32>
    %54 = vector.shape_cast %53 : vector<8xf32> to vector<8x1xf32>
    %55 = vector.broadcast %54 : vector<8x1xf32> to vector<8x8xf32>
    %56 = arith.divf %52, %55 : vector<8x8xf32>
    %57 = arith.truncf %56 : vector<8x8xf32> to vector<8x8xbf16>
    %cst_19 = arith.constant dense<0.000000e+00> : vector<8x8xf32>
    %58 = tpu.matmul %57, %44, %cst_19 {dimension_numbers = #tpu.dot_dimension_numbers<[1], [0], [0], [1], [0, 0, 1, 1], [], []>} : vector<8x8xbf16>, vector<8x8xbf16>, vector<8x8xf32> -> vector<8x8xf32>
    %59 = vector.extract_strided_slice %33 {offsets = [0, 8], sizes = [8, 8], strides = [1, 1]} : vector<8x32xf32> to vector<8x8xf32>
    %60 = arith.truncf %59 : vector<8x8xf32> to vector<8x8xbf16>
    %61 = vector.extract_strided_slice %34 {offsets = [0, 8], sizes = [8, 8], strides = [1, 1]} : vector<8x32xf32> to vector<8x8xf32>
    %62 = arith.truncf %61 : vector<8x8xf32> to vector<8x8xbf16>
    %63 = vector.extract_strided_slice %35 {offsets = [0, 8], sizes = [8, 8], strides = [1, 1]} : vector<8x32xf32> to vector<8x8xf32>
    %64 = arith.truncf %63 : vector<8x8xf32> to vector<8x8xbf16>
    %cst_20 = arith.constant dense<0.000000e+00> : vector<8x8xf32>
    %65 = tpu.matmul %60, %62, %cst_20 {dimension_numbers = #tpu.dot_dimension_numbers<[1], [1], [0], [0], [0, 0, 1, 0], [], []>} : vector<8x8xbf16>, vector<8x8xbf16>, vector<8x8xf32> -> vector<8x8xf32>
    %cst_21 = arith.constant -3.40282347E+38 : f32
    %66 = vector.broadcast %cst_21 : f32 to vector<8x8xf32>
    %67 = arith.select %38, %65, %66 : vector<8x8xi1>, vector<8x8xf32>
    %cst_22 = arith.constant dense<0xFF800000> : vector<8xf32>
    %68 = vector.multi_reduction <maximumf>, %67, %cst_22 [1] : vector<8x8xf32> to vector<8xf32>
    %69 = vector.shape_cast %68 : vector<8xf32> to vector<8x1xf32>
    %70 = vector.broadcast %69 : vector<8x1xf32> to vector<8x8xf32>
    %71 = arith.subf %67, %70 : vector<8x8xf32>
    %72 = math.exp %71 : vector<8x8xf32>
    %cst_23 = arith.constant dense<0.000000e+00> : vector<8xf32>
    %73 = vector.multi_reduction <add>, %72, %cst_23 [1] : vector<8x8xf32> to vector<8xf32>
    %74 = vector.shape_cast %73 : vector<8xf32> to vector<8x1xf32>
    %75 = vector.broadcast %74 : vector<8x1xf32> to vector<8x8xf32>
    %76 = arith.divf %72, %75 : vector<8x8xf32>
    %77 = arith.truncf %76 : vector<8x8xf32> to vector<8x8xbf16>
    %cst_24 = arith.constant dense<0.000000e+00> : vector<8x8xf32>
    %78 = tpu.matmul %77, %64, %cst_24 {dimension_numbers = #tpu.dot_dimension_numbers<[1], [0], [0], [1], [0, 0, 1, 1], [], []>} : vector<8x8xbf16>, vector<8x8xbf16>, vector<8x8xf32> -> vector<8x8xf32>
    %79 = vector.extract_strided_slice %33 {offsets = [0, 16], sizes = [8, 8], strides = [1, 1]} : vector<8x32xf32> to vector<8x8xf32>
    %80 = arith.truncf %79 : vector<8x8xf32> to vector<8x8xbf16>
    %81 = vector.extract_strided_slice %34 {offsets = [0, 16], sizes = [8, 8], strides = [1, 1]} : vector<8x32xf32> to vector<8x8xf32>
    %82 = arith.truncf %81 : vector<8x8xf32> to vector<8x8xbf16>
    %83 = vector.extract_strided_slice %35 {offsets = [0, 16], sizes = [8, 8], strides = [1, 1]} : vector<8x32xf32> to vector<8x8xf32>
    %84 = arith.truncf %83 : vector<8x8xf32> to vector<8x8xbf16>
    %cst_25 = arith.constant dense<0.000000e+00> : vector<8x8xf32>
    %85 = tpu.matmul %80, %82, %cst_25 {dimension_numbers = #tpu.dot_dimension_numbers<[1], [1], [0], [0], [0, 0, 1, 0], [], []>} : vector<8x8xbf16>, vector<8x8xbf16>, vector<8x8xf32> -> vector<8x8xf32>
    %cst_26 = arith.constant -3.40282347E+38 : f32
    %86 = vector.broadcast %cst_26 : f32 to vector<8x8xf32>
    %87 = arith.select %38, %85, %86 : vector<8x8xi1>, vector<8x8xf32>
    %cst_27 = arith.constant dense<0xFF800000> : vector<8xf32>
    %88 = vector.multi_reduction <maximumf>, %87, %cst_27 [1] : vector<8x8xf32> to vector<8xf32>
    %89 = vector.shape_cast %88 : vector<8xf32> to vector<8x1xf32>
    %90 = vector.broadcast %89 : vector<8x1xf32> to vector<8x8xf32>
    %91 = arith.subf %87, %90 : vector<8x8xf32>
    %92 = math.exp %91 : vector<8x8xf32>
    %cst_28 = arith.constant dense<0.000000e+00> : vector<8xf32>
    %93 = vector.multi_reduction <add>, %92, %cst_28 [1] : vector<8x8xf32> to vector<8xf32>
    %94 = vector.shape_cast %93 : vector<8xf32> to vector<8x1xf32>
    %95 = vector.broadcast %94 : vector<8x1xf32> to vector<8x8xf32>
    %96 = arith.divf %92, %95 : vector<8x8xf32>
    %97 = arith.truncf %96 : vector<8x8xf32> to vector<8x8xbf16>
    %cst_29 = arith.constant dense<0.000000e+00> : vector<8x8xf32>
    %98 = tpu.matmul %97, %84, %cst_29 {dimension_numbers = #tpu.dot_dimension_numbers<[1], [0], [0], [1], [0, 0, 1, 1], [], []>} : vector<8x8xbf16>, vector<8x8xbf16>, vector<8x8xf32> -> vector<8x8xf32>
    %99 = vector.extract_strided_slice %33 {offsets = [0, 24], sizes = [8, 8], strides = [1, 1]} : vector<8x32xf32> to vector<8x8xf32>
    %100 = arith.truncf %99 : vector<8x8xf32> to vector<8x8xbf16>
    %101 = vector.extract_strided_slice %34 {offsets = [0, 24], sizes = [8, 8], strides = [1, 1]} : vector<8x32xf32> to vector<8x8xf32>
    %102 = arith.truncf %101 : vector<8x8xf32> to vector<8x8xbf16>
    %103 = vector.extract_strided_slice %35 {offsets = [0, 24], sizes = [8, 8], strides = [1, 1]} : vector<8x32xf32> to vector<8x8xf32>
    %104 = arith.truncf %103 : vector<8x8xf32> to vector<8x8xbf16>
    %cst_30 = arith.constant dense<0.000000e+00> : vector<8x8xf32>
    %105 = tpu.matmul %100, %102, %cst_30 {dimension_numbers = #tpu.dot_dimension_numbers<[1], [1], [0], [0], [0, 0, 1, 0], [], []>} : vector<8x8xbf16>, vector<8x8xbf16>, vector<8x8xf32> -> vector<8x8xf32>
    %cst_31 = arith.constant -3.40282347E+38 : f32
    %106 = vector.broadcast %cst_31 : f32 to vector<8x8xf32>
    %107 = arith.select %38, %105, %106 : vector<8x8xi1>, vector<8x8xf32>
    %cst_32 = arith.constant dense<0xFF800000> : vector<8xf32>
    %108 = vector.multi_reduction <maximumf>, %107, %cst_32 [1] : vector<8x8xf32> to vector<8xf32>
    %109 = vector.shape_cast %108 : vector<8xf32> to vector<8x1xf32>
    %110 = vector.broadcast %109 : vector<8x1xf32> to vector<8x8xf32>
    %111 = arith.subf %107, %110 : vector<8x8xf32>
    %112 = math.exp %111 : vector<8x8xf32>
    %cst_33 = arith.constant dense<0.000000e+00> : vector<8xf32>
    %113 = vector.multi_reduction <add>, %112, %cst_33 [1] : vector<8x8xf32> to vector<8xf32>
    %114 = vector.shape_cast %113 : vector<8xf32> to vector<8x1xf32>
    %115 = vector.broadcast %114 : vector<8x1xf32> to vector<8x8xf32>
    %116 = arith.divf %112, %115 : vector<8x8xf32>
    %117 = arith.truncf %116 : vector<8x8xf32> to vector<8x8xbf16>
    %cst_34 = arith.constant dense<0.000000e+00> : vector<8x8xf32>
    %118 = tpu.matmul %117, %104, %cst_34 {dimension_numbers = #tpu.dot_dimension_numbers<[1], [0], [0], [1], [0, 0, 1, 1], [], []>} : vector<8x8xbf16>, vector<8x8xbf16>, vector<8x8xf32> -> vector<8x8xf32>
    %119 = tpu.concatenate %58, %78, %98, %118 in 1 : vector<8x8xf32>, vector<8x8xf32>, vector<8x8xf32>, vector<8x8xf32> -> vector<8x32xf32>
    %120 = arith.truncf %119 : vector<8x32xf32> to vector<8x32xbf16>
    %c0_35 = arith.constant 0 : index
    %c0_36 = arith.constant 0 : index
    %121 = vector.load %arg6[%c0_35, %c0_36] : memref<32x32xbf16, #tpu.memory_space<vmem>>, vector<32x32xbf16>
    %cst_37 = arith.constant dense<0.000000e+00> : vector<8x32xf32>
    %122 = tpu.matmul %120, %121, %cst_37 {dimension_numbers = #tpu.dot_dimension_numbers<[1], [0], [0], [1], [0, 0, 1, 1], [], []>} : vector<8x32xbf16>, vector<32x32xbf16>, vector<8x32xf32> -> vector<8x32xf32>
    %c0_38 = arith.constant 0 : index
    %c0_39 = arith.constant 0 : index
    %123 = vector.load %arg7[%c0_38, %c0_39] : memref<1x32xf32, #tpu.memory_space<vmem>>, vector<1x32xf32>
    %124 = vector.broadcast %123 : vector<1x32xf32> to vector<8x32xf32>
    %125 = arith.addf %122, %124 : vector<8x32xf32>
    %126 = arith.addf %2, %125 : vector<8x32xf32>
    %c0_40 = arith.constant 0 : index
    %c0_41 = arith.constant 0 : index
    %127 = vector.load %arg8[%c0_40, %c0_41] : memref<1x32xf32, #tpu.memory_space<vmem>>, vector<1x32xf32>
    %c0_42 = arith.constant 0 : index
    %c0_43 = arith.constant 0 : index
    %128 = vector.load %arg9[%c0_42, %c0_43] : memref<1x32xf32, #tpu.memory_space<vmem>>, vector<1x32xf32>
    %cst_44 = arith.constant dense<0.000000e+00> : vector<8xf32>
    %129 = vector.multi_reduction <add>, %126, %cst_44 [1] : vector<8x32xf32> to vector<8xf32>
    %130 = vector.shape_cast %129 : vector<8xf32> to vector<8x1xf32>
    %cst_45 = arith.constant 3.200000e+01 : f32
    %131 = vector.broadcast %cst_45 : f32 to vector<8x1xf32>
    %132 = arith.divf %130, %131 : vector<8x1xf32>
    %133 = vector.broadcast %132 : vector<8x1xf32> to vector<8x32xf32>
    %134 = arith.subf %126, %133 : vector<8x32xf32>
    %135 = arith.mulf %134, %134 : vector<8x32xf32>
    %cst_46 = arith.constant dense<0.000000e+00> : vector<8xf32>
    %136 = vector.multi_reduction <add>, %135, %cst_46 [1] : vector<8x32xf32> to vector<8xf32>
    %137 = vector.shape_cast %136 : vector<8xf32> to vector<8x1xf32>
    %cst_47 = arith.constant 3.200000e+01 : f32
    %138 = vector.broadcast %cst_47 : f32 to vector<8x1xf32>
    %139 = arith.divf %137, %138 : vector<8x1xf32>
    %140 = vector.broadcast %132 : vector<8x1xf32> to vector<8x32xf32>
    %141 = arith.subf %126, %140 : vector<8x32xf32>
    %cst_48 = arith.constant 9.99999974E-6 : f32
    %142 = vector.broadcast %cst_48 : f32 to vector<8x1xf32>
    %143 = arith.addf %139, %142 : vector<8x1xf32>
    %144 = math.rsqrt %143 : vector<8x1xf32>
    %145 = vector.broadcast %144 : vector<8x1xf32> to vector<8x32xf32>
    %146 = arith.mulf %141, %145 : vector<8x32xf32>
    %147 = vector.broadcast %127 : vector<1x32xf32> to vector<8x32xf32>
    %148 = arith.mulf %146, %147 : vector<8x32xf32>
    %149 = vector.broadcast %128 : vector<1x32xf32> to vector<8x32xf32>
    %150 = arith.addf %148, %149 : vector<8x32xf32>
    %151 = arith.truncf %150 : vector<8x32xf32> to vector<8x32xbf16>
    %c0_49 = arith.constant 0 : index
    %c0_50 = arith.constant 0 : index
    %152 = vector.load %arg10[%c0_49, %c0_50] : memref<32x128xbf16, #tpu.memory_space<vmem>>, vector<32x128xbf16>
    %cst_51 = arith.constant dense<0.000000e+00> : vector<8x128xf32>
    %153 = tpu.matmul %151, %152, %cst_51 {dimension_numbers = #tpu.dot_dimension_numbers<[1], [0], [0], [1], [0, 0, 1, 1], [], []>} : vector<8x32xbf16>, vector<32x128xbf16>, vector<8x128xf32> -> vector<8x128xf32>
    %c0_52 = arith.constant 0 : index
    %c0_53 = arith.constant 0 : index
    %154 = vector.load %arg11[%c0_52, %c0_53] : memref<1x128xf32, #tpu.memory_space<vmem>>, vector<1x128xf32>
    %155 = vector.broadcast %154 : vector<1x128xf32> to vector<8x128xf32>
    %156 = arith.addf %153, %155 : vector<8x128xf32>
    %cst_54 = arith.constant 5.000000e-01 : f32
    %157 = vector.broadcast %cst_54 : f32 to vector<8x128xf32>
    %158 = arith.mulf %157, %156 : vector<8x128xf32>
    %159 = arith.mulf %156, %156 : vector<8x128xf32>
    %160 = arith.mulf %156, %159 : vector<8x128xf32>
    %cst_55 = arith.constant 4.471500e-02 : f32
    %161 = vector.broadcast %cst_55 : f32 to vector<8x128xf32>
    %162 = arith.mulf %161, %160 : vector<8x128xf32>
    %163 = arith.addf %156, %162 : vector<8x128xf32>
    %cst_56 = arith.constant 0.797884583 : f32
    %164 = vector.broadcast %cst_56 : f32 to vector<8x128xf32>
    %165 = arith.mulf %164, %163 : vector<8x128xf32>
    %166 = math.tanh %165 : vector<8x128xf32>
    %cst_57 = arith.constant 1.000000e+00 : f32
    %167 = vector.broadcast %cst_57 : f32 to vector<8x128xf32>
    %168 = arith.addf %167, %166 : vector<8x128xf32>
    %169 = arith.mulf %158, %168 : vector<8x128xf32>
    %170 = arith.truncf %169 : vector<8x128xf32> to vector<8x128xbf16>
    %c0_58 = arith.constant 0 : index
    %c0_59 = arith.constant 0 : index
    %171 = vector.load %arg12[%c0_58, %c0_59] : memref<128x32xbf16, #tpu.memory_space<vmem>>, vector<128x32xbf16>
    %cst_60 = arith.constant dense<0.000000e+00> : vector<8x32xf32>
    %172 = tpu.matmul %170, %171, %cst_60 {dimension_numbers = #tpu.dot_dimension_numbers<[1], [0], [0], [1], [0, 0, 1, 1], [], []>} : vector<8x128xbf16>, vector<128x32xbf16>, vector<8x32xf32> -> vector<8x32xf32>
    %c0_61 = arith.constant 0 : index
    %c0_62 = arith.constant 0 : index
    %173 = vector.load %arg13[%c0_61, %c0_62] : memref<1x32xf32, #tpu.memory_space<vmem>>, vector<1x32xf32>
    %174 = vector.broadcast %173 : vector<1x32xf32> to vector<8x32xf32>
    %175 = arith.addf %172, %174 : vector<8x32xf32>
    %176 = arith.addf %126, %175 : vector<8x32xf32>
    %177 = arith.truncf %176 : vector<8x32xf32> to vector<8x32xbf16>
    %c0_63 = arith.constant 0 : index
    %c0_64 = arith.constant 0 : index
    %c0_65 = arith.constant 0 : index
    %178 = vector.load %arg16[%c0_63, %c0_64, %c0_65] : memref<1x8x32xbf16, #tpu.memory_space<vmem>>, vector<1x8x32xbf16>
    %179 = vector.shape_cast %178 : vector<1x8x32xbf16> to vector<8x32xbf16>
    %180 = vector.shape_cast %177 : vector<8x32xbf16> to vector<1x8x32xbf16>
    tpu.vector_store %arg16[%c0_63, %c0_64, %c0_65], %180 {strides = array<i32>} : memref<1x8x32xbf16, #tpu.memory_space<vmem>>, vector<1x8x32xbf16>,
    return
  }
  func.func @transform_0(%arg0: i32) -> (i32, i32, i32) {
    %c0_i32 = arith.constant 0 : i32
    %c0_i32_0 = arith.constant 0 : i32
    %c0_i32_1 = arith.constant 0 : i32
    return %arg0, %c0_i32, %c0_i32_0 : i32, i32, i32
  }
  func.func @transform_1(%arg0: i32) -> (i32, i32) {
    %c0_i32 = arith.constant 0 : i32
    %c0_i32_0 = arith.constant 0 : i32
    %c0_i32_1 = arith.constant 0 : i32
    return %c0_i32, %c0_i32_0 : i32, i32
  }
  func.func @transform_2(%arg0: i32) -> (i32, i32) {
    %c0_i32 = arith.constant 0 : i32
    %c0_i32_0 = arith.constant 0 : i32
    %c0_i32_1 = arith.constant 0 : i32
    return %c0_i32, %c0_i32_0 : i32, i32
  }
  func.func @transform_3(%arg0: i32) -> (i32, i32) {
    %c0_i32 = arith.constant 0 : i32
    %c0_i32_0 = arith.constant 0 : i32
    %c0_i32_1 = arith.constant 0 : i32
    return %c0_i32, %c0_i32_0 : i32, i32
  }
  func.func @transform_4(%arg0: i32) -> (i32, i32) {
    %c0_i32 = arith.constant 0 : i32
    %c0_i32_0 = arith.constant 0 : i32
    %c0_i32_1 = arith.constant 0 : i32
    return %c0_i32, %c0_i32_0 : i32, i32
  }
  func.func @transform_5(%arg0: i32) -> (i32, i32) {
    %c0_i32 = arith.constant 0 : i32
    %c0_i32_0 = arith.constant 0 : i32
    %c0_i32_1 = arith.constant 0 : i32
    return %c0_i32, %c0_i32_0 : i32, i32
  }
  func.func @transform_6(%arg0: i32) -> (i32, i32) {
    %c0_i32 = arith.constant 0 : i32
    %c0_i32_0 = arith.constant 0 : i32
    %c0_i32_1 = arith.constant 0 : i32
    return %c0_i32, %c0_i32_0 : i32, i32
  }
  func.func @transform_7(%arg0: i32) -> (i32, i32) {
    %c0_i32 = arith.constant 0 : i32
    %c0_i32_0 = arith.constant 0 : i32
    %c0_i32_1 = arith.constant 0 : i32
    return %c0_i32, %c0_i32_0 : i32, i32
  }
  func.func @transform_8(%arg0: i32) -> (i32, i32) {
    %c0_i32 = arith.constant 0 : i32
    %c0_i32_0 = arith.constant 0 : i32
    %c0_i32_1 = arith.constant 0 : i32
    return %c0_i32, %c0_i32_0 : i32, i32
  }
  func.func @transform_9(%arg0: i32) -> (i32, i32) {
    %c0_i32 = arith.constant 0 : i32
    %c0_i32_0 = arith.constant 0 : i32
    %c0_i32_1 = arith.constant 0 : i32
    return %c0_i32, %c0_i32_0 : i32, i32
  }
  func.func @transform_10(%arg0: i32) -> (i32, i32) {
    %c0_i32 = arith.constant 0 : i32
    %c0_i32_0 = arith.constant 0 : i32
    %c0_i32_1 = arith.constant 0 : i32
    return %c0_i32, %c0_i32_0 : i32, i32
  }
  func.func @transform_11(%arg0: i32) -> (i32, i32) {
    %c0_i32 = arith.constant 0 : i32
    %c0_i32_0 = arith.constant 0 : i32
    %c0_i32_1 = arith.constant 0 : i32
    return %c0_i32, %c0_i32_0 : i32, i32
  }
  func.func @transform_12(%arg0: i32) -> (i32, i32) {
    %c0_i32 = arith.constant 0 : i32
    %c0_i32_0 = arith.constant 0 : i32
    %c0_i32_1 = arith.constant 0 : i32
    return %c0_i32, %c0_i32_0 : i32, i32
  }
  func.func @transform_13(%arg0: i32) -> (i32, i32) {
    %c0_i32 = arith.constant 0 : i32
    %c0_i32_0 = arith.constant 0 : i32
    %c0_i32_1 = arith.constant 0 : i32
    return %c0_i32, %c0_i32_0 : i32, i32
  }
  func.func @transform_14(%arg0: i32) -> (i32, i32) {
    %c0_i32 = arith.constant 0 : i32
    %c0_i32_0 = arith.constant 0 : i32
    %c0_i32_1 = arith.constant 0 : i32
    return %c0_i32, %c0_i32_0 : i32, i32
  }
  func.func @transform_15(%arg0: i32) -> (i32, i32, i32) {
    %c0_i32 = arith.constant 0 : i32
    %c0_i32_0 = arith.constant 0 : i32
    %c0_i32_1 = arith.constant 0 : i32
    return %arg0, %c0_i32, %c0_i32_0 : i32, i32, i32
  }
}

</mosaic_0001>

<bundles_post_ra>
// kernel: tpu_custom_call.1
= control target key start
LH: loop header
LB: loop body
LE: loop exit
PB: predicated region body
PF: predicated region fallthrough
CT: control target
= control target key end

     0   :  { %s1736_s0 = inlined_call_operand.vmem [shape: bf16[2,8,32], index: 0, kind: input, shape index: {}]   ;;  %s1737_s1 = inlined_call_operand.vmem [shape: f32[1,32], index: 1, kind: input, shape index: {}]   ;;  %s1738_s2 = inlined_call_operand.vmem [shape: f32[1,32], index: 2, kind: input, shape index: {}]   ;;  %s1739_s3 = inlined_call_operand.vmem [shape: bf16[32,96], index: 3, kind: input, shape index: {}]   ;;  %s1740_s4 = inlined_call_operand.vmem [shape: f32[1,96], index: 4, kind: input, shape index: {}]   ;;  %s1741_s5 = inlined_call_operand.vmem [shape: bf16[32,32], index: 5, kind: input, shape index: {}]   ;;  %s1742_s6 = inlined_call_operand.vmem [shape: f32[1,32], index: 6, kind: input, shape index: {}]   ;;  %s1743_s7 = inlined_call_operand.vmem [shape: f32[1,32], index: 7, kind: input, shape index: {}]   ;;  %s1744_s8 = inlined_call_operand.vmem [shape: f32[1,32], index: 8, kind: input, shape index: {}]   ;;  %s1745_s9 = inlined_call_operand.vmem [shape: bf16[32,128], index: 9, kind: input, shape index: {}]   ;;  %s1746_s10 = inlined_call_operand.vmem [shape: f32[1,128], index: 10, kind: input, shape index: {}]   ;;  %s1747_s11 = inlined_call_operand.vmem [shape: bf16[128,32], index: 11, kind: input, shape index: {}]   ;;  %s1748_s12 = inlined_call_operand.vmem [shape: f32[1,32], index: 12, kind: input, shape index: {}]   ;;  %s1749_s13 = inlined_call_operand.vmem [shape: f32[1,32], index: 13, kind: input, shape index: {}]   ;;  %s1750_s14 = inlined_call_operand.vmem [shape: f32[1,32], index: 14, kind: input, shape index: {}]   ;;  %s1751_s15 = inlined_call_operand.hbm [shape: bf16[2,8,32], index: 15, kind: output, shape index: {}]  }
   0x1   :  { %1752 = sst [smem:[#allocation5_spill]] %s1736_s0 }
   0x2   :  { %1753 = sst [smem:[#allocation6_spill]] %s1737_s1 }
   0x3   :  { %1754 = sst [smem:[#allocation7_spill]] %s1738_s2 }
   0x4   :  { %20 = vsyncpa [#allocation3], 0 }
   0x5   :  { %22 = vsyncpa [#allocation3 + $0x1], 0  ;;  %s1487_s18 = smov 0   ;;  %s1489_s19 = smov 0  }
   0x6   :  { %s1491_s20 = smov 0   ;;  %s1493_s21 = smov 0  }
   0x7 LB: > { %s1508_s13 = sadd.s32 4294967295, %s1390_s21   ;;  %s1151_s14 = sadd.s32 4294967294, %s1390_s21   ;;  %s1390_s21 = sphi %s1493_s21, %s1763_s21   ;;  %s1386_s20 = sphi %s1491_s20, %s1762_s20   ;;  %s1382_s19 = sphi %s1489_s19, %s1761_s19   ;;  %s1378_s18 = sphi %s1487_s18, %s1760_s18  }
   0x8   : > { %s1512_s22 = sadd.s32 1, %s1390_s21   ;;  %s355_s23 = sadd.s32 1, %s1386_s20 }
   0x9   : > { %s352_s24 = ssub.s32 %s1390_s21, %s1512_s22  ;;  %p365_p0 = scmp.ne.s32.totalorder %s1386_s20, %s1382_s19 }
   0xa   : > { %p353_p1 = scmp.eq.s32.totalorder %s352_s24, 0  ;;  %p366_p2 = scmp.eq.s32.totalorder %s1508_s13, 1 }
   0xb   : > { %p371_p3 = scmp.ne.s32.totalorder %s1382_s19, %s1378_s18  ;;  %p372_p4 = scmp.eq.s32.totalorder %s1151_s14, 1 }
   0xc   : > { %s1523_s25 = scalar_select %p353_p1, %s1386_s20, %s355_s23  }
   0xd   : > { %p1525_p5 = por %p366_p2, %p365_p0  ;;  %p1529_p6 = por %p372_p4, %p371_p3 }
   0xe   : > { %p1154_p7 = scmp.ge.s32.totalorder %s1390_s21, 1  ;;  %p439_p8 = scmp.lt.s32.totalorder %s1390_s21, 3 }
  0x10   : > { %p440_p9 = pnand %p1154_p7, %p439_p8 }
  0x11   : > { %p486_p10 = scmp.lt.s32.totalorder (!%p440_p9), %s1508_s13, 1  ;;  %s1757_s0 = sld [smem:[#allocation5_spill]] (!%p440_p9) }
  0x12   : > { %443 = sbr.rel (%p440_p9) target bundleno = 2436 (0x984), region = 80  ;;  %s1758_s1 = sld [smem:[#allocation6_spill]] (!%p440_p9) }
  0x13   : > { %s1759_s2 = sld [smem:[#allocation7_spill]] (!%p440_p9)  ;;  %s1393_s24 = smov (!%p440_p9), 88  }
  0x14   : > { %s1396_s30 = smov (!%p440_p9), 72   ;;  %s1397_s16 = smov (!%p440_p9), 80  }
  0x15   : > { %s1399_s14 = smov (!%p440_p9), 104   ;;  %s1400_s23 = smov (!%p440_p9), 112  }
  0x17   : > { %s487_s28 = scalar_select %p486_p10, %s1508_s13, 1  ;;  %vm495_vm0 = vcmask 261120   ;;  %v1392_v3 = vmov 32.0   ;;  %v1229_v15 = vld [vmem:[%s1739_s3 + $0x8] sm:$0xff]  ;;  %v1228_v16 = vld [vmem:[%s1739_s3] sm:$0xff]  ;;  %vm630_vm5 = vcmask 1043456   ;;  %v570_v48 = vlaneseq }
  0x18   : > { %1304 = vrcp.f32 %v1392_v3  ;;  %563 = vmatpush.bf16.msra.mxu0 %v1229_v15  ;;  %v1296_v26 = vld [vmem:[%s1758_s1] ss:$0 sm:$0xff]  ;;  %vm579_vm6 = vcmask 64512  }
  0x19   : > { %s1156_s29 = sshll.u32 %s487_s28, 2  ;;  %v1297_v29 = vld [vmem:[%s1759_s2] ss:$0 sm:$0xff]  ;;  %s1394_s28 = smov 64   ;;  %v1580_v49 = vshrl.u32 %v570_v48, 7  ;;  %v1582_v50 = vand.u32 127, %v570_v48 }
  0x1a   : > { %s489_s17 = scalar_lea.vmem %s1757_s0, %s1156_s29  ;;  %v1298_v33 = vld [vmem:[%s1740_s4] ss:$0 sm:$0xff]  ;;  %s1395_s29 = smov 96  }
  0x1b   : > { %v491_v0 = vld [vmem:[%s489_s17] sm:$0xf]  ;;  %vm574_vm7 = vcmp.ge.s32.totalorder %v1580_v49, %v1582_v50  ;;  %s1398_s17 = smov 120   ;;  %s483_s0 = sand.u32 1, %s1382_s19  }
  0x1c   : > { %v1540_v1 = vunpack.c.l.bf16 %v491_v0  ;;  %564 = vmatpush.bf16.msra.mxu0 %v1228_v16  ;;  %s1155_s1 = sshll.u32 %s483_s0, 2 }
  0x1e   : > { %v496_v2 = vsel %vm495_vm0, %v1540_v1, 0.0  ;;  %v1305_v4 = vpop.eup %1304 }
  0x1f   : > { %497 = vadd.xlane.f32.xlu0 %v496_v2  ;;  %v500_v5 = vmul.f32 32.0, %v1305_v4  ;;  %vm504_vm1 = vweird.f32 %v1305_v4 }
  0x21   : > { %v501_v6 = vsub.f32 1.0, %v500_v5 }
  0x23   : > { %v502_v7 = vmul.f32 %v1305_v4, %v501_v6 }
  0x25   : > { %v503_v8 = vadd.f32 %v1305_v4, %v502_v7 }
  0x27   : > { %v1544_v9 = vsel %vm504_vm1, %v1305_v4, %v503_v8 }
  0x92   : > { %v498_v10 = vpop.xlane.xlu0 %497 }
  0x93   : > { %v506_v11 = vmul.f32 %v1544_v9, %v498_v10 }
  0x95   : > { %v507_v12 = vsub.f32 %v1540_v1, %v506_v11 }
  0x97   : > { %v508_v13 = vmul.f32 %v507_v12, %v507_v12 }
  0x99   : > { %v509_v14 = vsel %vm495_vm0, %v508_v13, 0.0 }
  0x9a   : > { %510 = vadd.xlane.f32.xlu0 %v509_v14 }
 0x10d   : > { %v511_v17 = vpop.xlane.xlu0 %510 }
 0x10e   : > { %v512_v18 = vmul.f32 %v511_v17, %v1544_v9 }
 0x110   : > { %v513_v19 = vadd.f32 1e-05, %v512_v18 }
 0x112   : > { %1306 = vrsqrt.f32 %v513_v19  ;;  %vm520_vm3 = vweird.f32 %v513_v19 }
 0x118   : > { %v1307_v20 = vpop.eup %1306 }
 0x119   : > { %v515_v21 = vmul.f32 %v1307_v20, %v513_v19  ;;  %vm521_vm2 = vweird.f32 %v1307_v20 }
 0x11a   : > { %vm522_vm4 = vmor %vm520_vm3, %vm521_vm2 }
 0x11b   : > { %v516_v22 = vmul.f32 %v1307_v20, %v515_v21 }
 0x11d   : > { %v517_v23 = vmul.f32 0.5, %v516_v22 }
 0x11f   : > { %v518_v24 = vsub.f32 1.5, %v517_v23 }
 0x121   : > { %v519_v25 = vmul.f32 %v1307_v20, %v518_v24 }
 0x123   : > { %v523_v27 = vsel %vm522_vm4, %v1307_v20, %v519_v25 }
 0x124   : > { %v524_v28 = vmul.f32 %v523_v27, %v507_v12 }
 0x126   : > { %v528_v30 = vmul.f32 %v1296_v26, %v524_v28 }
 0x128   : > { %v532_v31 = vadd.f32 %v1297_v29, %v528_v30 }
 0x12a   : > { %v533_v32 = vpack.c.bf16 %v532_v31, %v532_v31 }
 0x12c   : > { %1165 = vmatmul.msk.bf16.vlgmr.msra.gmra.mxu0 %vm495_vm0, %v533_v32 }
 0x1a9   : > { %v566_v34 = vpop.f32.mrf.mxu0 }
 0x1aa   : > { %v567_v35 = vadd.f32 %v1298_v33, %v566_v34 }
 0x1ac   : > { %v1566_v36 = vpack.c.bf16 %v567_v35, %v567_v35 }
 0x1ae   : > { %649 = vrot.lane.b32.xlu0 %v1566_v36, %s1393_s24  ;;  %625 = vrot.lane.b32.xlu2 %v1566_v36, %s1394_s28  ;;  %s1401_s24 = smov 40   ;;  %s1402_s28 = smov 56  }
 0x1af   : > { %577 = vrot.lane.b32.xlu1 %v1566_v36, %s1395_s29  ;;  %s1403_s29 = smov 48  }
 0x1b1   : > { %v568_v37 = vpop.f32.mrf.mxu0 }
 0x1b6   : > { %789 = vrot.lane.b32.xlu0 %v1566_v36, %s1396_s30  ;;  %s1404_s30 = smov 8  }
 0x1be   : > { %719 = vrot.lane.b32.xlu0 %v1566_v36, %s1397_s16  ;;  %s1405_s16 = smov 16  }
 0x208   : > { %v626_v38 = vpop.permute.xlu2 %625 }
 0x209   : > { %v632_v39 = vsel %vm630_vm5, %v626_v38, 0 }
 0x20a   : > { %641 = vmatpush.bf16.msra.mxu2 %v632_v39 }
 0x220   : > { %v650_v40 = vpop.permute.xlu0 %649 }
 0x221   : > { %v578_v41 = vpop.permute.xlu1 %577  ;;  %v655_v42 = vsel %vm579_vm6, %v650_v40, 0 }
 0x222   : > { %v584_v43 = vsel %vm579_vm6, %v578_v41, 0  ;;  %664 = vmatpush.bf16.xpose.msrb.mxu2 %v655_v42 }
 0x223   : > { %593 = vmatpush.bf16.xpose.msra.mxu1 %v584_v43 }
 0x228   : > { %v790_v44 = vpop.permute.xlu0 %789 }
 0x229   : > { %v795_v45 = vsel %vm579_vm6, %v790_v44, 0 }
 0x22a   : > { %1166 = vmatmul.msk.bf16.vlgmr.msra.gmra.mxu1 %vm579_vm6, %v1566_v36  ;;  %804 = vmatpush.bf16.xpose.msra.mxu3 %v795_v45 }
 0x230   : > { %v720_v46 = vpop.permute.xlu0 %719 }
 0x231   : > { %v725_v47 = vsel %vm579_vm6, %v720_v46, 0 }
 0x232   : > { %734 = vmatpush.bf16.xpose.msrb.mxu0 %v725_v47 }
 0x2a7   : > { %v595_v51 = vpop.f32.mrf.mxu1 }
 0x2a8   : > { %v599_v52 = vsel %vm574_vm7, %v595_v51, -3.4028235e+38 }
 0x2a9   : > { %v600_v53 = vsel %vm579_vm6, %v599_v52, -inf }
 0x2aa   : > { %601 = vmax.xlane.f32.xlu1 %v600_v53 }
 0x2af   : > { %v597_v54 = vpop.f32.mrf.mxu1 }
 0x31d   : > { %v602_v55 = vpop.xlane.xlu1 %601 }
 0x31e   : > { %v603_v56 = vsub.f32 %v599_v52, %v602_v55 }
 0x320   : > { %v604_v57 = vmul.f32 1.442695, %v603_v56 }
 0x322   : > { %1308 = vpow2.f32 %v604_v57 }
 0x328   : > { %v1309_v58 = vpop.eup %1308 }
 0x329   : > { %v606_v59 = vsel %vm579_vm6, %v1309_v58, 0.0 }
 0x32a   : > { %607 = vadd.xlane.f32.xlu2 %v606_v59 }
 0x342   : > { %647 = vrot.lane.b32.xlu2 %v1566_v36, %s1398_s17  ;;  %s1406_s17 = smov 24  }
 0x34a   : > { %787 = vrot.lane.b32.xlu2 %v1566_v36, %s1399_s14 }
 0x352   : > { %717 = vrot.lane.b32.xlu2 %v1566_v36, %s1400_s23  ;;  %s1348_s23 = scalar_lea.hbm %s1751_s15, 8 }
 0x39d   : > { %v608_v60 = vpop.xlane.xlu2 %607 }
 0x39e   : > { %1310 = vrcp.f32 %v608_v60  ;;  %v620_v2 = vand.u32 2147483648, %v608_v60  ;;  %v618_v4 = vand.u32 2147483647, %v608_v60  ;;  %vm614_vm9 = vweird.f32 %v608_v60 }
 0x3a0   : > { %v621_v6 = vor.u32 1.1754944e-38, %v620_v2  ;;  %vm619_vm11 = vcmp.eq.f32.partialorder %v618_v4, 8.507059e+37 }
 0x3a4   : > { %v1311_v61 = vpop.eup %1310 }
 0x3a5   : > { %v610_v62 = vmul.f32 %v1311_v61, %v608_v60  ;;  %v648_v63 = vpop.permute.xlu2 %647  ;;  %vm615_vm8 = vweird.f32 %v1311_v61 }
 0x3a6   : > { %vm616_vm10 = vmor %vm614_vm9, %vm615_vm8 }
 0x3a7   : > { %v611_v0 = vsub.f32 1.0, %v610_v62 }
 0x3a9   : > { %v612_v3 = vmul.f32 %v1311_v61, %v611_v0 }
 0x3ab   : > { %v613_v5 = vadd.f32 %v1311_v61, %v612_v3 }
 0x3ad   : > { %v788_v7 = vpop.permute.xlu2 %787  ;;  %v617_v8 = vsel %vm616_vm10, %v1311_v61, %v613_v5 }
 0x3ae   : > { %1172 = vmatmul.msk.bf16.vlgmr.msra.gmra.mxu3 %vm579_vm6, %v788_v7  ;;  %v622_v10 = vsel %vm619_vm11, %v621_v6, %v617_v8  ;;  %vm872_vm11 = vcmask 195584  }
 0x3af   : > { %v623_v11 = vmul.f32 %v1309_v58, %v622_v10 }
 0x3b1   : > { %v624_v12 = vpack.c.bf16 %v623_v11, %v623_v11 }
 0x3b3   : > { %1167 = vmatmul.msk.bf16.vlgmr.msra.gmra.mxu2 %vm579_vm6, %v624_v12 }
 0x3b5   : > { %v718_v13 = vpop.permute.xlu2 %717 }
 0x3b6   : > { %1170 = vmatmul.msk.bf16.vlgmr.msrb.gmra.mxu0 %vm579_vm6, %v718_v13 }
 0x3c3   : > { %1168 = vmatmul.msk.bf16.vlgmr.msrb.gmra.mxu2 %vm579_vm6, %v648_v63 }
 0x431   : > { %v806_v14 = vpop.f32.mrf.mxu3 }
 0x432   : > { %v810_v15 = vsel %vm574_vm7, %v806_v14, -3.4028235e+38 }
 0x433   : > { %v736_v16 = vpop.f32.mrf.mxu0  ;;  %v811_v17 = vsel %vm579_vm6, %v810_v15, -inf }
 0x434   : > { %v740_v18 = vsel %vm574_vm7, %v736_v16, -3.4028235e+38  ;;  %812 = vmax.xlane.f32.xlu0 %v811_v17 }
 0x435   : > { %v741_v19 = vsel %vm579_vm6, %v740_v18, -inf }
 0x436   : > { %v1606_v20 = vpop.f32.mrf.mxu2  ;;  %742 = vmax.xlane.f32.xlu2 %v741_v19 }
 0x439   : > { %v808_v21 = vpop.f32.mrf.mxu3 }
 0x43b   : > { %v738_v22 = vpop.f32.mrf.mxu0 }
 0x43e   : > { %v645_v23 = vpop.f32.mrf.mxu2 }
 0x446   : > { %v666_v24 = vpop.f32.mrf.mxu2 }
 0x447   : > { %v670_v37 = vsel %vm574_vm7, %v666_v24, -3.4028235e+38 }
 0x448   : > { %v671_v38 = vsel %vm579_vm6, %v670_v37, -inf }
 0x44e   : > { %v668_v25 = vpop.f32.mrf.mxu2  ;;  %836 = vrot.lane.b32.xlu2 %v1566_v36, %s1401_s24 }
 0x4a7   : > { %v813_v26 = vpop.xlane.xlu0 %812 }
 0x4a8   : > { %v814_v27 = vsub.f32 %v810_v15, %v813_v26 }
 0x4a9   : > { %v743_v28 = vpop.xlane.xlu2 %742 }
 0x4aa   : > { %v815_v29 = vmul.f32 1.442695, %v814_v27  ;;  %v744_v30 = vsub.f32 %v740_v18, %v743_v28 }
 0x4ac   : > { %1312 = vpow2.f32 %v815_v29  ;;  %v745_v31 = vmul.f32 1.442695, %v744_v30 }
 0x4ae   : > { %1314 = vpow2.f32 %v745_v31 }
 0x4b1   : > { %v837_v45 = vpop.permute.xlu2 %836 }
 0x4b2   : > { %v1609_v32 = vpop.eup %1312  ;;  %v842_v48 = vsel %vm630_vm5, %v837_v45, 0 }
 0x4b3   : > { %v817_v33 = vsel %vm579_vm6, %v1609_v32, 0.0 }
 0x4b4   : > { %v1613_v34 = vpop.eup %1314  ;;  %818 = vadd.xlane.f32.xlu1 %v817_v33 }
 0x4b5   : > { %v747_v35 = vsel %vm579_vm6, %v1613_v34, 0.0 }
 0x4b6   : > { %748 = vadd.xlane.f32.xlu0 %v747_v35 }
 0x4bc   : > { %672 = vmax.xlane.f32.xlu1 %v671_v38 }
 0x4d5   : > { %696 = vrot.lane.b32.xlu1 %v1566_v36, %s1402_s28 }
 0x527   : > { %v1622_v39 = vpop.xlane.xlu1 %818 }
 0x528   : > { %v831_v15 = vand.u32 2147483648, %v1622_v39  ;;  %vm825_vm8 = vweird.f32 %v1622_v39  ;;  %v829_v17 = vand.u32 2147483647, %v1622_v39 }
 0x529   : > { %v749_v49 = vpop.xlane.xlu0 %748 }
 0x52a   : > { %v761_v0 = vand.u32 2147483648, %v749_v49  ;;  %vm755_vm15 = vweird.f32 %v749_v49  ;;  %v759_v3 = vand.u32 2147483647, %v749_v49  ;;  %v832_v22 = vor.u32 1.1754944e-38, %v831_v15 }
 0x52b   : > { %vm830_vm10 = vcmp.eq.f32.partialorder %v829_v17, 8.507059e+37 }
 0x52c   : > { %v762_v10 = vor.u32 1.1754944e-38, %v761_v0  ;;  %vm760_vm4 = vcmp.eq.f32.partialorder %v759_v3, 8.507059e+37  ;;  %v1301_v3 = vld [vmem:[%s1744_s8] ss:$0 sm:$0xff] }
 0x52f   : > { %v673_v40 = vpop.xlane.xlu1 %672 }
 0x530   : > { %v674_v41 = vsub.f32 %v670_v37, %v673_v40 }
 0x532   : > { %v675_v42 = vmul.f32 1.442695, %v674_v41 }
 0x534   : > { %1316 = vpow2.f32 %v675_v42 }
 0x535   : > { %1318 = vrcp.f32 %v749_v49 }
 0x536   : > { %1320 = vrcp.f32 %v1622_v39 }
 0x53a   : > { %v1317_v43 = vpop.eup %1316 }
 0x53b   : > { %v677_v44 = vsel %vm579_vm6, %v1317_v43, 0.0  ;;  %v1319_v50 = vpop.eup %1318 }
 0x53c   : > { %678 = vadd.xlane.f32.xlu1 %v677_v44  ;;  %v751_v52 = vmul.f32 %v1319_v50, %v749_v49  ;;  %v1321_v54 = vpop.eup %1320  ;;  %vm756_vm13 = vweird.f32 %v1319_v50 }
 0x53d   : > { %v821_v58 = vmul.f32 %v1321_v54, %v1622_v39  ;;  %vm757_vm2 = vmor %vm755_vm15, %vm756_vm13  ;;  %vm826_vm7 = vweird.f32 %v1321_v54 }
 0x53e   : > { %v752_v53 = vsub.f32 1.0, %v751_v52  ;;  %vm827_vm9 = vmor %vm825_vm8, %vm826_vm7 }
 0x53f   : > { %v822_v63 = vsub.f32 1.0, %v821_v58 }
 0x540   : > { %v753_v57 = vmul.f32 %v1319_v50, %v752_v53  ;;  %v1233_v53 = vld [vmem:[%s1745_s9 + $0x8] sm:$0xff] }
 0x541   : > { %v823_v8 = vmul.f32 %v1321_v54, %v822_v63 }
 0x542   : > { %v754_v62 = vadd.f32 %v1319_v50, %v753_v57  ;;  %v1240_v57 = vld [vmem:[%s1747_s11 + $0x30] sm:$0xff] }
 0x543   : > { %v824_v14 = vadd.f32 %v1321_v54, %v823_v8  ;;  %v1238_v8 = vld [vmem:[%s1747_s11 + $0x20] sm:$0xff] }
 0x544   : > { %v758_v7 = vsel %vm757_vm2, %v1319_v50, %v754_v62 }
 0x545   : > { %v763_v13 = vsel %vm760_vm4, %v762_v10, %v758_v7  ;;  %v828_v21 = vsel %vm827_vm9, %v1321_v54, %v824_v14  ;;  %v1241_v54 = vld [vmem:[%s1747_s11 + $0x38] sm:$0xff]  ;;  %v1239_v7 = vld [vmem:[%s1747_s11 + $0x28] sm:$0xff]  ;;  %v1302_v14 = vld [vmem:[%s1746_s10] ss:$0 sm:$0xff] }
 0x546   : > { %v764_v16 = vmul.f32 %v1613_v34, %v763_v13  ;;  %v833_v24 = vsel %vm830_vm10, %v832_v22, %v828_v21  ;;  %v1231_v34 = vld [vmem:[%s1741_s5 + $0x8] sm:$0xff]  ;;  %1059 = vmatpush.bf16.msrb.mxu3 %v1241_v54  ;;  %v1237_v10 = vld [vmem:[%s1747_s11 + $0x18] sm:$0xff]  ;;  %v1234_v13 = vld [vmem:[%s1747_s11] sm:$0xff] }
 0x547   : > { %v697_v46 = vpop.permute.xlu1 %696  ;;  %v834_v25 = vmul.f32 %v1609_v32, %v833_v24  ;;  %904 = vmatpush.bf16.msra.mxu0 %v1231_v34  ;;  %v1230_v32 = vld [vmem:[%s1741_s5] sm:$0xff] }
 0x548   : > { %v702_v47 = vsel %vm630_vm5, %v697_v46, 0  ;;  %v765_v23 = vpack.c.bf16 %v764_v16, %v764_v16 }
 0x549   : > { %711 = vmatpush.bf16.msra.mxu2 %v702_v47  ;;  %v835_v26 = vpack.c.bf16 %v834_v25, %v834_v25 }
 0x54a   : > { %1060 = vmatpush.bf16.msrb.mxu3 %v1240_v57 }
 0x54b   : > { %905 = vmatpush.bf16.msra.mxu0 %v1230_v32 }
 0x54d   : > { %851 = vmatpush.bf16.msrb.mxu2 %v842_v48 }
 0x54e   : > { %1061 = vmatpush.bf16.msrb.mxu3 %v1239_v7 }
 0x552   : > { %1062 = vmatpush.bf16.msrb.mxu3 %v1238_v8 }
 0x555   : > { %766 = vrot.lane.b32.xlu1 %v1566_v36, %s1403_s29  ;;  %s485_s29 = scalar_lea.vmem [#allocation2], %s1155_s1 }
 0x556   : > { %1063 = vmatpush.bf16.msrb.mxu3 %v1237_v10 }
 0x5af   : > { %v679_v51 = vpop.xlane.xlu1 %678 }
 0x5b0   : > { %1322 = vrcp.f32 %v679_v51  ;;  %v691_v60 = vand.u32 2147483648, %v679_v51  ;;  %v689_v36 = vand.u32 2147483647, %v679_v51  ;;  %vm685_vm14 = vweird.f32 %v679_v51 }
 0x5b2   : > { %v692_v4 = vor.u32 1.1754944e-38, %v691_v60  ;;  %vm690_vm3 = vcmp.eq.f32.partialorder %v689_v36, 8.507059e+37 }
 0x5b6   : > { %v1323_v55 = vpop.eup %1322 }
 0x5b7   : > { %v681_v56 = vmul.f32 %v1323_v55, %v679_v51  ;;  %vm686_vm12 = vweird.f32 %v1323_v55 }
 0x5b8   : > { %vm687_vm1 = vmor %vm685_vm14, %vm686_vm12 }
 0x5b9   : > { %v682_v59 = vsub.f32 1.0, %v681_v56 }
 0x5bb   : > { %v683_v61 = vmul.f32 %v1323_v55, %v682_v59 }
 0x5bd   : > { %v684_v2 = vadd.f32 %v1323_v55, %v683_v61 }
 0x5bf   : > { %v688_v5 = vsel %vm687_vm1, %v1323_v55, %v684_v2 }
 0x5c0   : > { %v693_v6 = vsel %vm690_vm3, %v692_v4, %v688_v5 }
 0x5c1   : > { %v694_v11 = vmul.f32 %v1317_v43, %v693_v6  ;;  %v1299_v43 = vld [vmem:[%s1742_s6] ss:$0 sm:$0xff] }
 0x5c3   : > { %v695_v12 = vpack.c.bf16 %v694_v11, %v694_v11  ;;  %v1236_v11 = vld [vmem:[%s1747_s11 + $0x10] sm:$0xff] }
 0x5c4   : > { %1064 = vmatpush.bf16.msrb.mxu3 %v1236_v11 }
 0x5c5   : > { %1169 = vmatmul.msk.bf16.vlgmr.msra.gmra.mxu2 %vm579_vm6, %v695_v12  ;;  %v1235_v12 = vld [vmem:[%s1747_s11 + $0x8] sm:$0xff] }
 0x5c7   : > { %v767_v18 = vpop.permute.xlu1 %766 }
 0x5c8   : > { %v772_v19 = vsel %vm630_vm5, %v767_v18, 0  ;;  %vm870_vm5 = vcmask 130048   ;;  %1065 = vmatpush.bf16.msrb.mxu3 %v1235_v12 }
 0x5c9   : > { %781 = vmatpush.bf16.msrb.mxu1 %v772_v19 }
 0x5cc   : > { %1171 = vmatmul.msk.bf16.vlgmr.msrb.gmra.mxu1 %vm579_vm6, %v765_v23  ;;  %1066 = vmatpush.bf16.msrb.mxu3 %v1234_v13 }
 0x5cd   : > { %974 = vmatpush.bf16.msra.mxu1 %v1233_v53 }
 0x5d5   : > { %1173 = vmatmul.msk.bf16.vlgmr.msrb.gmra.mxu2 %vm579_vm6, %v835_v26 }
 0x648   : > { %v713_v27 = vpop.f32.mrf.mxu2 }
 0x649   : > { %858 = vrot.lane.b32.xlu0 %v713_v27, %s1404_s30  ;;  %v783_v28 = vpop.f32.mrf.mxu1  ;;  %s1089_s30 = sshll.u32 %s485_s29, 4  ;;  %s1090_s30 = int_to_ptr.vmem [resolvable:$true] %s1089_s30 }
 0x64a   : > { %862 = vrot.lane.b32.xlu1 %v783_v28, %s1405_s16  ;;  %s1225_s16 = sshll.u32 %s1508_s13, 2  ;;  %s1077_s13 = scalar_lea.sflag [#allocation3], %s483_s0 }
 0x64b   : > { %s1087_s28 = scalar_lea.hbm %s1751_s15, %s1225_s16 }
 0x64c   : > { %s1091_s2 = sshll.u32 %s1087_s28, 4  ;;  %s1092_s2 = int_to_ptr.hbm [resolvable:$true] %s1091_s2 }
 0x650   : > { %v715_v29 = vpop.f32.mrf.mxu2 }
 0x651   : > { %v785_v30 = vpop.f32.mrf.mxu1  ;;  %v1303_v29 = vld [vmem:[%s1748_s12] ss:$0 sm:$0xff] }
 0x658   : > { %v853_v31 = vpop.f32.mrf.mxu2 }
 0x659   : > { %866 = vrot.lane.b32.xlu1 %v853_v31, %s1406_s17  ;;  %s1342_s17 = sshra.s32 %s1092_s2, 4  ;;  %s1343_s17 = int_to_ptr.hbm [resolvable:$true] %s1342_s17 }
 0x65a   : > { %s1344_s14 = scalar_lea.hbm %s1343_s17, 4  ;;  %p1349_p0 = scmp.lt.s32.totalorder %s1343_s17, %s1751_s15 }
 0x65b   : > { %p1345_p11 = scmp.ne.s32.totalorder %s1343_s17, %s1344_s14  ;;  %p1350_p1 = scmp.lt.s32.totalorder %s1348_s23, %s1344_s14 }
 0x65d   : > { %p1346_p12 = pnand %p1345_p11, %p1525_p5  ;;  %p1351_p2 = por %p1350_p1, %p1349_p0 }
 0x65f   : > { %p1347_p13 = pneg %p1346_p12 }
 0x660   : > { %v855_v33 = vpop.f32.mrf.mxu2 }
 0x661   : > { %p1352_p3 = pnand %p1351_p2, %p1347_p13 }
 0x6bb   : > { %v859_v37 = vpop.permute.xlu0 %858 }
 0x6bc   : > { %v863_v35 = vpop.permute.xlu1 %862  ;;  %v869_v38 = vsel %vm579_vm6, %v1606_v20, %v859_v37 }
 0x6bd   : > { %v871_v39 = vsel %vm870_vm5, %v869_v38, %v863_v35 }
 0x6cb   : > { %v867_v40 = vpop.permute.xlu1 %866 }
 0x6cc   : > { %v873_v41 = vsel %vm872_vm11, %v871_v39, %v867_v40 }
 0x6cd   : > { %v874_v42 = vpack.c.bf16 %v873_v41, %v873_v41 }
 0x6cf   : > { %1182 = vmatmul.msk.bf16.vlgmr.msra.gmra.mxu0 %vm495_vm0, %v874_v42 }
 0x74c   : > { %v907_v44 = vpop.f32.mrf.mxu0 }
 0x74d   : > { %v908_v45 = vadd.f32 %v1299_v43, %v907_v44 }
 0x74f   : > { %v1652_v46 = vadd.f32 %v908_v45, %v1540_v1  ;;  %v1232_v1 = vld [vmem:[%s1745_s9] sm:$0xff] }
 0x750   : > { %975 = vmatpush.bf16.msra.mxu1 %v1232_v1 }
 0x751   : > { %v914_v20 = vsel %vm495_vm0, %v1652_v46, 0.0 }
 0x752   : > { %915 = vadd.xlane.f32.xlu2 %v914_v20 }
 0x754   : > { %v909_v47 = vpop.f32.mrf.mxu0 }
 0x7c5   : > { %v916_v48 = vpop.xlane.xlu2 %915 }
 0x7c6   : > { %v917_v49 = vmul.f32 %v916_v48, %v1544_v9 }
 0x7c8   : > { %v918_v50 = vsub.f32 %v1652_v46, %v917_v49 }
 0x7ca   : > { %v919_v51 = vmul.f32 %v918_v50, %v918_v50 }
 0x7cc   : > { %v920_v52 = vsel %vm495_vm0, %v919_v51, 0.0 }
 0x7cd   : > { %921 = vadd.xlane.f32.xlu0 %v920_v52 }
 0x840   : > { %v922_v55 = vpop.xlane.xlu0 %921 }
 0x841   : > { %v923_v56 = vmul.f32 %v922_v55, %v1544_v9  ;;  %v1300_v9 = vld [vmem:[%s1743_s7] ss:$0 sm:$0xff] }
 0x843   : > { %v924_v58 = vadd.f32 1e-05, %v923_v56 }
 0x845   : > { %1324 = vrsqrt.f32 %v924_v58  ;;  %vm931_vm12 = vweird.f32 %v924_v58 }
 0x84b   : > { %v1325_v59 = vpop.eup %1324 }
 0x84c   : > { %v926_v60 = vmul.f32 %v1325_v59, %v924_v58  ;;  %vm932_vm6 = vweird.f32 %v1325_v59 }
 0x84d   : > { %vm933_vm13 = vmor %vm931_vm12, %vm932_vm6 }
 0x84e   : > { %v927_v61 = vmul.f32 %v1325_v59, %v926_v60 }
 0x850   : > { %v928_v36 = vmul.f32 0.5, %v927_v61 }
 0x852   : > { %v929_v62 = vsub.f32 1.5, %v928_v36 }
 0x854   : > { %v930_v63 = vmul.f32 %v1325_v59, %v929_v62 }
 0x856   : > { %v934_v0 = vsel %vm933_vm13, %v1325_v59, %v930_v63 }
 0x857   : > { %v935_v2 = vmul.f32 %v934_v0, %v918_v50 }
 0x859   : > { %v939_v4 = vmul.f32 %v1300_v9, %v935_v2 }
 0x85b   : > { %v943_v5 = vadd.f32 %v1301_v3, %v939_v4 }
 0x85d   : > { %v944_v6 = vpack.c.bf16 %v943_v5, %v943_v5 }
 0x85f   : > { %1191 = vmatmul.msk.bf16.vlgmr.msra.gmra.mxu1 %vm495_vm0, %v944_v6  ;;  %vm1074_vm0 = vcmask 257024  }
 0x8dc   : > { %v977_v15 = vpop.f32.mrf.mxu1 }
 0x8dd   : > { %v978_v16 = vadd.f32 %v1302_v14, %v977_v15 }
 0x8df   : > { %v982_v17 = vmul.f32 %v978_v16, %v978_v16  ;;  %v981_v25 = vmul.f32 0.5, %v978_v16 }
 0x8e1   : > { %v983_v18 = vmul.f32 %v982_v17, %v978_v16 }
 0x8e3   : > { %v984_v19 = vmul.f32 0.044715, %v983_v18 }
 0x8e4   : > { %v979_v21 = vpop.f32.mrf.mxu1 }
 0x8e5   : > { %v985_v22 = vadd.f32 %v984_v19, %v978_v16 }
 0x8e7   : > { %v986_v23 = vmul.f32 0.7978846, %v985_v22 }
 0x8e9   : > { %1326 = vtanh.f32 %v986_v23 }
 0x8ef   : > { %v1327_v24 = vpop.eup %1326 }
 0x8f0   : > { %v988_v26 = vadd.f32 1.0, %v1327_v24 }
 0x8f2   : > { %v989_v27 = vmul.f32 %v988_v26, %v981_v25 }
 0x8f4   : > { %v990_v28 = vpack.c.bf16 %v989_v27, %v989_v27 }
 0x8f6   : > { %1067 = vmatmul.bf16.vlgmr.msrb.gmra.mxu3 %v990_v28 }
 0x979   : > { %v1068_v30 = vpop.f32.mrf.mxu3 }
 0x97a   : > { %v1069_v31 = vadd.f32 %v1303_v29, %v1068_v30 }
 0x97c   : > { %v1072_v33 = vadd.f32 %v1069_v31, %v1652_v46 }
 0x97e   : > { %v1073_v34 = vpack.c.bf16 %v1072_v33, %v1072_v33 }
 0x980   : > { %1075 = vst.msk [vmem:[%s485_s29] sm:$0xf] %vm1074_vm0, %v1073_v34 }
 0x981   : > { %v1070_v32 = vpop.f32.mrf.mxu3 }
 0x982   : > { %1355 = shalt.err (!%p1352_p3)
}
 0x983   : > { %1242 = dma.vmem_to_hbm [thread:$0]  (%p1525_p5), %s1090_s30, 64, %s1092_s2, %s1077_s13  }
 0x984 PF: > { %p1248_p4 = scmp.ge.s32.totalorder %s1390_s21, 2  ;;  %s1103_s0 = sand.u32 1, %s1378_s18  }
 0x985   : > { %s1104_s29 = scalar_lea.sflag [#allocation3], %s1103_s0 }
 0x986   : > { %p1245_p7 = pnand %p1248_p4, %p1529_p6 }
 0x988   : > { %p1246_p8 = pneg %p1245_p7 }
 0x98a   : > { %1373 = dma.done.wait (%p1246_p8), %s1104_s29, 64  }
 0x98b   : > { %1375 = vsyncadd (%p1246_p8), %s1104_s29, 4294967232  ;;  %p25_p9 = scmp.ge.s32.totalorder %s1512_s22, 4   ;;  %s1760_s18 = smov %s1382_s19 }
 0x98c   : > { %s1761_s19 = smov %s1386_s20  ;;  %s1762_s20 = smov %s1523_s25 }
 0x98d   : > { %s1763_s21 = smov %s1512_s22  ;;  %27 = sbr.rel (!%p25_p9) target bundleno = 7 (0x7), region = 115 }
 0x992   :  { %1110 = vsyncpa [#allocation3], 1 }
 0x993   :  { %1112 = vsyncpa [#allocation3 + $0x1], 1 }

</bundles_post_ra>
